<compile_context>
chip_gen: v7x
topology: tpu7x:2x2x1
jax: 0.10.0
libtpu: 0.0.40
codegen_flags: <defaults>
</compile_context>

<pallas_src>
import functools

import jax
import jax.numpy as jnp
from jax import lax
from jax.experimental import pallas as pl
from jax.experimental.pallas import tpu as pltpu

_PAD = 8  # sublane-aligned offset of the real columns inside the W-padded scratch


def _tokenizer_kernel(p_ref, w_ref, o_ref, s1_ref, s2_ref, *,
                      block_b, H, W, Hout, Wout, Cout):
    # ---- conv as one fused im2col matmul over the whole batch block (MXU hot path) ----
    # p_ref: (block_b*H*W, 9*Cin), w_ref: (9*Cin, Cout)
    conv = jnp.dot(p_ref[...], w_ref[...], preferred_element_type=jnp.float32)

    # ---- ReLU (VPU); tile-aligned reshape (H, W multiples of 8) ----
    relu = jnp.maximum(conv, 0.0).reshape(block_b, H, W, Cout)

    # ---- MaxPool2d(kernel=3, stride=2, padding=1), separable (3 + 3 window reads) ----
    # 0-padding is equivalent to PyTorch's -inf pool padding here because ReLU >= 0 and
    # every pooling window contains at least one interior element.

    # Stage 1: pool along W.  Real columns live at sublane offset _PAD so the big store
    # is 8-aligned (unmasked); only column _PAD-1 of the pad region is ever read.
    s1_ref[:, :, _PAD - 1:_PAD, :] = jnp.zeros((block_b, H, 1, Cout), jnp.float32)
    s1_ref[:, :, _PAD:_PAD + W, :] = relu
    wp = jnp.maximum(
        jnp.maximum(
            s1_ref[:, :, pl.ds(_PAD - 1, Wout, stride=2), :],   # cols 2j-1 (pad at j=0)
            s1_ref[:, :, pl.ds(_PAD, Wout, stride=2), :]),      # cols 2j
        s1_ref[:, :, pl.ds(_PAD + 1, Wout, stride=2), :])       # cols 2j+1

    # Stage 2: pool along H.  The pad row sits on the untiled leading dim, so both the
    # pad write and the interior write at offset 1 are aligned.
    s2_ref[:, 0:1, :, :] = jnp.zeros((block_b, 1, Wout, Cout), jnp.float32)
    s2_ref[:, 1:H + 1, :, :] = wp
    pooled = jnp.maximum(
        jnp.maximum(
            s2_ref[:, pl.ds(0, Hout, stride=2), :, :],           # rows 2i-1 (pad at i=0)
            s2_ref[:, pl.ds(1, Hout, stride=2), :, :]),          # rows 2i
        s2_ref[:, pl.ds(2, Hout, stride=2), :, :])               # rows 2i+1

    # ---- flatten(H', W') + transpose(-2, -1): (H', W', C) -> (H'*W', C) ----
    # TODO(synk): a lane-dense (.., 128)-wide output block would avoid half-masked
    # Cout=64 stores but needs an in-kernel cross-lane relayout; kept simple for robustness.
    o_ref[...] = pooled.reshape(block_b, Hout * Wout, Cout)


def _pick_block_b(B):
    """Images folded into one matmul per grid step: keep >= 2 parallel steps when
    B >= 2 (both v7x TensorCores get work), cap the block to bound VMEM usage."""
    if B <= 1:
        return 1
    bb = max(1, min(32, B // 2))
    while B % bb:
        bb -= 1
    return bb


def tokenizer_cct_forward(x_nchw, w_oihw):
    """x_nchw: [B, Cin, H, W] f32; w_oihw: [Cout, Cin, 3, 3] f32 (PyTorch layout, no bias)."""
    B, Cin, H, W = x_nchw.shape
    Cout = w_oihw.shape[0]
    K = 3
    assert H % 2 == 0 and W % 2 == 0 and H >= 2 and W >= 2
    Hout = (H + 2 - K) // 2 + 1
    Wout = (W + 2 - K) // 2 + 1

    block_b = _pick_block_b(B)
    grid = (B // block_b,)

    # ---- glue (XLA): NCHW -> NHWC, zero-pad, im2col; rows ordered (b, h, w) so a
    # batch block folds straight into the matmul M dimension. ----
    # TODO(synk): for large images, move im2col into the kernel (DMA the raw padded
    # NHWC image) to avoid materializing the 9x-expanded patches array in HBM.
    x_nhwc = jnp.transpose(x_nchw, (0, 2, 3, 1))
    xp = jnp.pad(x_nhwc, ((0, 0), (1, 1), (1, 1), (0, 0)))
    cols = [xp[:, kh:kh + H, kw:kw + W, :] for kh in range(K) for kw in range(K)]
    patches = jnp.concatenate(cols, axis=-1).reshape(B * H * W, K * K * Cin)

    # im2col weight, feature ordering (kh*3 + kw)*Cin + cin to match `cols` above.
    w_im2col = jnp.transpose(w_oihw, (2, 3, 1, 0)).reshape(K * K * Cin, Cout)

    kernel = functools.partial(
        _tokenizer_kernel, block_b=block_b, H=H, W=W,
        Hout=Hout, Wout=Wout, Cout=Cout)

    return pl.pallas_call(
        kernel,
        out_shape=jax.ShapeDtypeStruct((B, Hout * Wout, Cout), jnp.float32),
        grid_spec=pltpu.PrefetchScalarGridSpec(
            num_scalar_prefetch=0,
            grid=grid,
            in_specs=[
                pl.BlockSpec((block_b * H * W, K * K * Cin), lambda b: (b, 0)),
                pl.BlockSpec((K * K * Cin, Cout), lambda b: (0, 0)),
            ],
            out_specs=pl.BlockSpec((block_b, Hout * Wout, Cout), lambda b: (b, 0, 0)),
            scratch_shapes=[
                pltpu.VMEM((block_b, H, _PAD + W, Cout), jnp.float32),
                pltpu.VMEM((block_b, H + 1, Wout, Cout), jnp.float32),
            ],
        ),
        compiler_params=pltpu.CompilerParams(dimension_semantics=("parallel",)),
    )(patches, w_im2col)


def _reference_forward(x_nchw, w_oihw):
    """Pure-JAX (XLA) reference matching the PyTorch module semantics."""
    y = lax.conv_general_dilated(
        x_nchw, w_oihw, window_strides=(1, 1), padding=((1, 1), (1, 1)),
        dimension_numbers=("NCHW", "OIHW", "NCHW"))
    y = jnp.maximum(y, 0.0)
    y = lax.reduce_window(
        y, -jnp.inf, lax.max,
        window_dimensions=(1, 1, 3, 3), window_strides=(1, 1, 2, 2),
        padding=((0, 0), (0, 0), (1, 1), (1, 1)))
    B, C, Hp, Wp = y.shape
    return jnp.transpose(y.reshape(B, C, Hp * Wp), (0, 2, 1))


if __name__ == "__main__":
    key = jax.random.PRNGKey(0)
    kx, kw = jax.random.split(key)

    B, Cin, H, W = 2, 3, 16, 16          # module default: n_input_channels=3
    Cout = 64                            # module default: n_output_channels=64

    x = jax.random.normal(kx, (B, Cin, H, W), dtype=jnp.float32)
    # Deterministic conv weight, PyTorch layout (Cout, Cin, kH, kW), no bias.
    conv_weight = jax.random.normal(kw, (Cout, Cin, 3, 3), dtype=jnp.float32) * 0.1

    out = jax.block_until_ready(tokenizer_cct_forward(x, conv_weight))
    ref = jax.block_until_ready(_reference_forward(x, conv_weight))

    assert out.shape == (B, 8 * 8, Cout), out.shape
    assert jnp.allclose(out, ref, atol=1e-4, rtol=1e-4), "mismatch vs XLA reference"

    print("KERNEL_OK")
</pallas_src>

<mosaic_0001>
module attributes {stable_mosaic.version = 11 : i64} {
  func.func @_tokenizer_kernel(%arg0: i32, %arg1: memref<256x27xf32, #tpu.memory_space<vmem>>, %arg2: memref<27x64xf32, #tpu.memory_space<vmem>>, %arg3: memref<1x64x64xf32, #tpu.memory_space<vmem>>, %arg4: memref<1x16x24x64xf32, #tpu.memory_space<vmem>>, %arg5: memref<1x17x8x64xf32, #tpu.memory_space<vmem>>) attributes {dimension_semantics = [#tpu.dimension_semantics<parallel>], iteration_bounds = array<i64: 2>, scalar_prefetch = 0 : i64, scratch_operands = 2 : i64, tpu.core_type = #tpu.core_type<tc>, window_params = [{transform_indices = @transform_0, window_bounds = array<i64: 256, 27>}, {pipeline_mode = #tpu.pipeline_mode<synchronous>, transform_indices = @transform_1, window_bounds = array<i64: 27, 64>}, {transform_indices = @transform_2, window_bounds = array<i64: 1, 64, 64>}]} {
    %c0 = arith.constant 0 : index
    %c0_0 = arith.constant 0 : index
    %0 = vector.load %arg1[%c0, %c0_0] : memref<256x27xf32, #tpu.memory_space<vmem>>, vector<256x27xf32>
    %c0_1 = arith.constant 0 : index
    %c0_2 = arith.constant 0 : index
    %1 = vector.load %arg2[%c0_1, %c0_2] : memref<27x64xf32, #tpu.memory_space<vmem>>, vector<27x64xf32>
    %cst = arith.constant dense<0.000000e+00> : vector<256x64xf32>
    %2 = tpu.matmul %0, %1, %cst {dimension_numbers = #tpu.dot_dimension_numbers<[1], [0], [0], [1], [0, 0, 1, 1], [], []>} : vector<256x27xf32>, vector<27x64xf32>, vector<256x64xf32> -> vector<256x64xf32>
    %cst_3 = arith.constant 0.000000e+00 : f32
    %3 = vector.broadcast %cst_3 : f32 to vector<256x64xf32>
    %4 = arith.maximumf %2, %3 : vector<256x64xf32>
    %5 = vector.shape_cast %4 : vector<256x64xf32> to vector<1x16x16x64xf32>
    %cst_4 = arith.constant 0.000000e+00 : f32
    %6 = vector.broadcast %cst_4 : f32 to vector<1x16x1x64xf32>
    %c0_5 = arith.constant 0 : index
    %c0_6 = arith.constant 0 : index
    %c7 = arith.constant 7 : index
    %c0_7 = arith.constant 0 : index
    %7 = vector.load %arg4[%c0_5, %c0_6, %c7, %c0_7] : memref<1x16x24x64xf32, #tpu.memory_space<vmem>>, vector<1x16x1x64xf32>
    tpu.vector_store %arg4[%c0_5, %c0_6, %c7, %c0_7], %6 {strides = array<i32>} : memref<1x16x24x64xf32, #tpu.memory_space<vmem>>, vector<1x16x1x64xf32>,
    %c0_8 = arith.constant 0 : index
    %c0_9 = arith.constant 0 : index
    %c8 = arith.constant 8 : index
    %c0_10 = arith.constant 0 : index
    %8 = vector.load %arg4[%c0_8, %c0_9, %c8, %c0_10] : memref<1x16x24x64xf32, #tpu.memory_space<vmem>>, vector<1x16x16x64xf32>
    tpu.vector_store %arg4[%c0_8, %c0_9, %c8, %c0_10], %5 {strides = array<i32>} : memref<1x16x24x64xf32, #tpu.memory_space<vmem>>, vector<1x16x16x64xf32>,
    %c0_11 = arith.constant 0 : index
    %c0_12 = arith.constant 0 : index
    %c7_13 = arith.constant 7 : index
    %c0_14 = arith.constant 0 : index
    %9 = tpu.strided_load %arg4[%c0_11, %c0_12, %c7_13, %c0_14] {strides = array<i32: 1, 1, 2, 1>} : memref<1x16x24x64xf32, #tpu.memory_space<vmem>>, vector<1x16x8x64xf32>
    %c0_15 = arith.constant 0 : index
    %c0_16 = arith.constant 0 : index
    %c8_17 = arith.constant 8 : index
    %c0_18 = arith.constant 0 : index
    %10 = tpu.strided_load %arg4[%c0_15, %c0_16, %c8_17, %c0_18] {strides = array<i32: 1, 1, 2, 1>} : memref<1x16x24x64xf32, #tpu.memory_space<vmem>>, vector<1x16x8x64xf32>
    %11 = arith.maximumf %9, %10 : vector<1x16x8x64xf32>
    %c0_19 = arith.constant 0 : index
    %c0_20 = arith.constant 0 : index
    %c9 = arith.constant 9 : index
    %c0_21 = arith.constant 0 : index
    %12 = tpu.strided_load %arg4[%c0_19, %c0_20, %c9, %c0_21] {strides = array<i32: 1, 1, 2, 1>} : memref<1x16x24x64xf32, #tpu.memory_space<vmem>>, vector<1x16x8x64xf32>
    %13 = arith.maximumf %11, %12 : vector<1x16x8x64xf32>
    %cst_22 = arith.constant 0.000000e+00 : f32
    %14 = vector.broadcast %cst_22 : f32 to vector<1x1x8x64xf32>
    %c0_23 = arith.constant 0 : index
    %c0_24 = arith.constant 0 : index
    %c0_25 = arith.constant 0 : index
    %c0_26 = arith.constant 0 : index
    %15 = vector.load %arg5[%c0_23, %c0_24, %c0_25, %c0_26] : memref<1x17x8x64xf32, #tpu.memory_space<vmem>>, vector<1x1x8x64xf32>
    tpu.vector_store %arg5[%c0_23, %c0_24, %c0_25, %c0_26], %14 {strides = array<i32>} : memref<1x17x8x64xf32, #tpu.memory_space<vmem>>, vector<1x1x8x64xf32>,
    %c0_27 = arith.constant 0 : index
    %c1 = arith.constant 1 : index
    %c0_28 = arith.constant 0 : index
    %c0_29 = arith.constant 0 : index
    %16 = vector.load %arg5[%c0_27, %c1, %c0_28, %c0_29] : memref<1x17x8x64xf32, #tpu.memory_space<vmem>>, vector<1x16x8x64xf32>
    tpu.vector_store %arg5[%c0_27, %c1, %c0_28, %c0_29], %13 {strides = array<i32>} : memref<1x17x8x64xf32, #tpu.memory_space<vmem>>, vector<1x16x8x64xf32>,
    %c0_30 = arith.constant 0 : index
    %c0_31 = arith.constant 0 : index
    %c0_32 = arith.constant 0 : index
    %c0_33 = arith.constant 0 : index
    %17 = tpu.strided_load %arg5[%c0_30, %c0_31, %c0_32, %c0_33] {strides = array<i32: 1, 2, 1, 1>} : memref<1x17x8x64xf32, #tpu.memory_space<vmem>>, vector<1x8x8x64xf32>
    %c0_34 = arith.constant 0 : index
    %c1_35 = arith.constant 1 : index
    %c0_36 = arith.constant 0 : index
    %c0_37 = arith.constant 0 : index
    %18 = tpu.strided_load %arg5[%c0_34, %c1_35, %c0_36, %c0_37] {strides = array<i32: 1, 2, 1, 1>} : memref<1x17x8x64xf32, #tpu.memory_space<vmem>>, vector<1x8x8x64xf32>
    %19 = arith.maximumf %17, %18 : vector<1x8x8x64xf32>
    %c0_38 = arith.constant 0 : index
    %c2 = arith.constant 2 : index
    %c0_39 = arith.constant 0 : index
    %c0_40 = arith.constant 0 : index
    %20 = tpu.strided_load %arg5[%c0_38, %c2, %c0_39, %c0_40] {strides = array<i32: 1, 2, 1, 1>} : memref<1x17x8x64xf32, #tpu.memory_space<vmem>>, vector<1x8x8x64xf32>
    %21 = arith.maximumf %19, %20 : vector<1x8x8x64xf32>
    %22 = vector.shape_cast %21 : vector<1x8x8x64xf32> to vector<1x64x64xf32>
    %c0_41 = arith.constant 0 : index
    %c0_42 = arith.constant 0 : index
    %c0_43 = arith.constant 0 : index
    %23 = vector.load %arg3[%c0_41, %c0_42, %c0_43] : memref<1x64x64xf32, #tpu.memory_space<vmem>>, vector<1x64x64xf32>
    tpu.vector_store %arg3[%c0_41, %c0_42, %c0_43], %22 {strides = array<i32>} : memref<1x64x64xf32, #tpu.memory_space<vmem>>, vector<1x64x64xf32>,
    return
  }
  func.func @transform_0(%arg0: i32) -> (i32, i32) {
    %c0_i32 = arith.constant 0 : i32
    %c0_i32_0 = arith.constant 0 : i32
    return %arg0, %c0_i32 : i32, i32
  }
  func.func @transform_1(%arg0: i32) -> (i32, i32) {
    %c0_i32 = arith.constant 0 : i32
    %c0_i32_0 = arith.constant 0 : i32
    %c0_i32_1 = arith.constant 0 : i32
    return %c0_i32, %c0_i32_0 : i32, i32
  }
  func.func @transform_2(%arg0: i32) -> (i32, i32, i32) {
    %c0_i32 = arith.constant 0 : i32
    %c0_i32_0 = arith.constant 0 : i32
    %c0_i32_1 = arith.constant 0 : i32
    return %arg0, %c0_i32, %c0_i32_0 : i32, i32, i32
  }
}

</mosaic_0001>

<bundles_post_ra>
// kernel: tpu_custom_call.1
= control target key start
LH: loop header
LB: loop body
LE: loop exit
PB: predicated region body
PF: predicated region fallthrough
CT: control target
= control target key end

     0   :  { %7 = vsyncpa [#allocation5], 0  ;;  %s1409_s0 = inlined_call_operand.vmem [shape: f32[512,27], index: 0, kind: input, shape index: {}]   ;;  %s1410_s1 = inlined_call_operand.vmem [shape: f32[27,64], index: 1, kind: input, shape index: {}]   ;;  %s1411_s2 = inlined_call_operand.hbm [shape: f32[2,64,64], index: 2, kind: output, shape index: {}]  }
   0x1   :  { %9 = vsyncpa [#allocation5 + $0x1], 0  ;;  %s1138_s9 = smov 0   ;;  %s1140_s10 = smov 0  }
   0x2   :  { %s1142_s11 = smov 0   ;;  %s1144_s12 = smov 0  }
   0x3 LB: > { %s1159_s13 = sadd.s32 4294967295, %s1116_s12   ;;  %s859_s14 = sadd.s32 4294967294, %s1116_s12   ;;  %s1116_s12 = sphi %s1144_s12, %s1417_s12   ;;  %s1112_s11 = sphi %s1142_s11, %s1416_s11   ;;  %s1108_s10 = sphi %s1140_s10, %s1415_s10   ;;  %s1104_s9 = sphi %s1138_s9, %s1414_s9  }
   0x4   : > { %s1163_s15 = sadd.s32 1, %s1116_s12   ;;  %s69_s16 = sadd.s32 1, %s1112_s11 }
   0x5   : > { %s66_s17 = ssub.s32 %s1116_s12, %s1163_s15  ;;  %p79_p0 = scmp.ne.s32.totalorder %s1112_s11, %s1108_s10 }
   0x6   : > { %p67_p1 = scmp.eq.s32.totalorder %s66_s17, 0  ;;  %p80_p2 = scmp.eq.s32.totalorder %s1159_s13, 1 }
   0x7   : > { %p85_p3 = scmp.ne.s32.totalorder %s1108_s10, %s1104_s9  ;;  %p86_p4 = scmp.eq.s32.totalorder %s859_s14, 1 }
   0x8   : > { %s1174_s18 = scalar_select %p67_p1, %s1112_s11, %s69_s16  }
   0x9   : > { %p1176_p5 = por %p80_p2, %p79_p0  ;;  %p1180_p6 = por %p86_p4, %p85_p3 }
   0xa   : > { %p862_p7 = scmp.ge.s32.totalorder %s1116_s12, 1  ;;  %p116_p8 = scmp.lt.s32.totalorder %s1116_s12, 3 }
   0xc   : > { %p117_p9 = pnand %p862_p7, %p116_p8 }
   0xd   : > { %v176_v0 = vld [vmem:[%s1410_s1] sm:$0xff] (!%p117_p9)  ;;  %v177_v1 = vld [vmem:[%s1410_s1 + $0x8] sm:$0xff] (!%p117_p9)  ;;  %v178_v2 = vld [vmem:[%s1410_s1 + $0x10] sm:$0xff] (!%p117_p9)  ;;  %vm277_vm0 = vcmask (!%p117_p9), 1042432   ;;  %s864_s27 = sshll.u32 (!%p117_p9), %s1159_s13, 5  ;;  %vm1118_vm1 = vmmov (!%p117_p9), 1  }
   0xe   : > { %120 = sbr.rel (%p117_p9) target bundleno = 312 (0x138), region = 28  ;;  %v997_v3 = vpack.c.bf16 (!%p117_p9), %v177_v1, %v176_v0  ;;  %v179_v4 = vld [vmem:[%s1410_s1 + $0x18] sm:$0x7] (!%p117_p9)  ;;  %p139_p10 = scmp.lt.s32.totalorder (!%p117_p9), %s864_s27, 63  ;;  %vm1002_vm2 = vmpackc.low (!%p117_p9), %vm277_vm0, %vm1118_vm1  ;;  %vm180_vm3 = vcmask (!%p117_p9), 220160   ;;  %vm555_vm4 = vcmask (!%p117_p9), 523264  }
   0xf   : > { %v1001_v5 = vpack.c.bf16 (!%p117_p9), %v179_v4, %v178_v2  ;;  %vm538_vm5 = vcmask (!%p117_p9), 516096   ;;  %v1119_v38 = vmov (!%p117_p9), 0.0   ;;  %s135_s6 = sand.u32 (!%p117_p9), 1, %s1108_s10   ;;  %s904_s14 = sshll.u32 (!%p117_p9), %s1159_s13, 10 }
  0x10   : > { %998 = vmatprep.subr.bf16.mxu0 (!%p117_p9), %v997_v3  ;;  %1007 = vmatprep.subr.bf16.mxu1 (!%p117_p9), %v997_v3  ;;  %539 = vst.msk [vmem:[#allocation2 + $0x7] sm:$0x1] (!%p117_p9), %vm538_vm5, %v1119_v38  ;;  %540 = vst.msk [vmem:[#allocation2 + $0x1f] sm:$0x1] (!%p117_p9), %vm538_vm5, %v1119_v38  ;;  %s1318_s7 = sshll.u32 (!%p117_p9), %s135_s6, 6  ;;  %s1356_s22 = scalar_lea.hbm (!%p117_p9), %s1411_s2, %s904_s14 }
  0x11   : > { %1000 = vmatpush3.bf16.msra.mxu0 (!%p117_p9), %v997_v3  ;;  %1009 = vmatpush3.bf16.msra.mxu1 (!%p117_p9), %v997_v3  ;;  %541 = vst.msk [vmem:[#allocation2 + $0x37] sm:$0x1] (!%p117_p9), %vm538_vm5, %v1119_v38  ;;  %542 = vst.msk [vmem:[#allocation2 + $0x4f] sm:$0x1] (!%p117_p9), %vm538_vm5, %v1119_v38  ;;  %s1328_s8 = scalar_lea.vmem (!%p117_p9), [#allocation4], %s1318_s7  ;;  %s1368_s13 = scalar_lea.sflag (!%p117_p9), [#allocation5], %s135_s6 }
  0x12   : > { %1003 = vmatprep.subr.msk.bf16.mxu0 (!%p117_p9), %vm1002_vm2, %v1001_v5  ;;  %1008 = vmatprep.subr.msk.bf16.mxu1 (!%p117_p9), %vm1002_vm2, %v1001_v5  ;;  %543 = vst.msk [vmem:[#allocation2 + $0x67] sm:$0x1] (!%p117_p9), %vm538_vm5, %v1119_v38  ;;  %544 = vst.msk [vmem:[#allocation2 + $0x7f] sm:$0x1] (!%p117_p9), %vm538_vm5, %v1119_v38  ;;  %s797_s16 = sshll.u32 (!%p117_p9), %s1328_s8, 4  ;;  %s1120_s24 = smov (!%p117_p9), [#allocation4]   ;;  %s1358_s16 = int_to_ptr.vmem [resolvable:$true] %s797_s16 }
  0x13   : > { %545 = vst.msk [vmem:[#allocation2 + $0x97] sm:$0x1] (!%p117_p9), %vm538_vm5, %v1119_v38  ;;  %546 = vst.msk [vmem:[#allocation2 + $0xaf] sm:$0x1] (!%p117_p9), %vm538_vm5, %v1119_v38  ;;  %s1054_s23 = scalar_lea.vmem (!%p117_p9), %s1358_s16, 1024  ;;  %s1058_s25 = sshll.u32 (!%p117_p9), %s1120_s24, 4  ;;  %s1059_s25 = int_to_ptr.vmem [resolvable:$false] %s1058_s25 }
  0x14   : > { %547 = vst.msk [vmem:[#allocation2 + $0xc7] sm:$0x1] (!%p117_p9), %vm538_vm5, %v1119_v38  ;;  %548 = vst.msk [vmem:[#allocation2 + $0xdf] sm:$0x1] (!%p117_p9), %vm538_vm5, %v1119_v38  ;;  %p1055_p11 = scmp.ne.s32.totalorder (!%p117_p9), %s1358_s16, %s1054_s23  ;;  %s1060_s26 = scalar_lea.vmem (!%p117_p9), %s1059_s25, 2048 }
  0x15   : > { %s1419_s27 = smov (!%p139_p10, %s864_s27), 63  ;;  %1006 = vmatpush3.bf16.msk.msra.mxu0 %vm1002_vm2, %v1001_v5  ;;  %1010 = vmatpush3.bf16.msk.msra.mxu1 %vm1002_vm2, %v1001_v5  ;;  %549 = vst.msk [vmem:[#allocation2 + $0xf7] sm:$0x1] %vm538_vm5, %v1119_v38  ;;  %550 = vst.msk [vmem:[#allocation2 + $0x10f] sm:$0x1] %vm538_vm5, %v1119_v38  ;;  %p1061_p0 = scmp.lt.s32.totalorder %s1358_s16, %s1059_s25 }
  0x16   : > { %s865_s30 = sshll.u32 %s1419_s27, 3  ;;  %551 = vst.msk [vmem:[#allocation2 + $0x127] sm:$0x1] %vm538_vm5, %v1119_v38  ;;  %552 = vst.msk [vmem:[#allocation2 + $0x13f] sm:$0x1] %vm538_vm5, %v1119_v38  ;;  %p1056_p12 = pnand %p1055_p11, %p1176_p5 }
  0x17   : > { %s1202_s5 = scalar_lea.vmem %s1409_s0, %s865_s30  ;;  %553 = vst.msk [vmem:[#allocation2 + $0x157] sm:$0x1] %vm538_vm5, %v1119_v38  ;;  %554 = vst.msk [vmem:[#allocation2 + $0x16f] sm:$0x1] %vm538_vm5, %v1119_v38  ;;  %p1062_p1 = scmp.lt.s32.totalorder %s1060_s26, %s1054_s23 }
  0x18   : > { %v144_v6 = vld [vmem:[%s1202_s5] sm:$0xff]  ;;  %v145_v8 = vld [vmem:[%s1202_s5 + $0x8] sm:$0xff]  ;;  %v146_v10 = vld [vmem:[%s1202_s5 + $0x10] sm:$0xff]  ;;  %716 = vst.msk [vmem:[#allocation3] sm:$0xff] %vm555_vm4, %v1119_v38  ;;  %p1057_p13 = pneg %p1056_p12 }
  0x19   : > { %v160_v7 = vld [vmem:[%s1202_s5 + $0x80] sm:$0xff]  ;;  %v161_v9 = vld [vmem:[%s1202_s5 + $0x88] sm:$0xff]  ;;  %949 = vmatprep.mubr.msk.f32.mxu0 %vm180_vm3, %v144_v6  ;;  %v162_v11 = vld [vmem:[%s1202_s5 + $0x90] sm:$0xff]  ;;  %p1063_p2 = por %p1062_p1, %p1061_p0 }
  0x1a   : > { %973 = vmatprep.mubr.msk.f32.mxu1 %vm180_vm3, %v160_v7  ;;  %950 = vmatmul.mubr.msk.f32.vlgmr.msra.gmra.mrb[0].mxu0 %vm180_vm3, %v145_v8  ;;  %v147_v12 = vld [vmem:[%s1202_s5 + $0x18] sm:$0xff]  ;;  %v148_v14 = vld [vmem:[%s1202_s5 + $0x20] sm:$0xff]  ;;  %v149_v16 = vld [vmem:[%s1202_s5 + $0x28] sm:$0xff] }
  0x1b   : > { %974 = vmatmul.mubr.msk.f32.vlgmr.msra.gmra.mrb[0].mxu1 %vm180_vm3, %v161_v9  ;;  %952 = vmatprep.mubr.msk.f32.mxu0 %vm180_vm3, %v146_v10  ;;  %v163_v13 = vld [vmem:[%s1202_s5 + $0x98] sm:$0xff]  ;;  %v164_v15 = vld [vmem:[%s1202_s5 + $0xa0] sm:$0xff]  ;;  %v165_v17 = vld [vmem:[%s1202_s5 + $0xa8] sm:$0xff]  ;;  %p1064_p3 = pnand %p1063_p2, %p1057_p13 }
  0x1c   : > { %976 = vmatprep.mubr.msk.f32.mxu1 %vm180_vm3, %v162_v11  ;;  %v150_v18 = vld [vmem:[%s1202_s5 + $0x30] sm:$0xff]  ;;  %v151_v20 = vld [vmem:[%s1202_s5 + $0x38] sm:$0xff]  ;;  %v152_v22 = vld [vmem:[%s1202_s5 + $0x40] sm:$0xff] }
  0x1d   : > { %v166_v19 = vld [vmem:[%s1202_s5 + $0xb0] sm:$0xff]  ;;  %v167_v21 = vld [vmem:[%s1202_s5 + $0xb8] sm:$0xff]  ;;  %v168_v23 = vld [vmem:[%s1202_s5 + $0xc0] sm:$0xff] }
  0x1e   : > { %953 = vmatmul.mubr.msk.f32.gmra.mrb[2].mxu0 %vm180_vm3, %v147_v12  ;;  %v153_v24 = vld [vmem:[%s1202_s5 + $0x48] sm:$0xff]  ;;  %v154_v26 = vld [vmem:[%s1202_s5 + $0x50] sm:$0xff]  ;;  %v155_v28 = vld [vmem:[%s1202_s5 + $0x58] sm:$0xff] }
  0x1f   : > { %977 = vmatmul.mubr.msk.f32.gmra.mrb[2].mxu1 %vm180_vm3, %v163_v13  ;;  %955 = vmatprep.mubr.msk.f32.mxu0 %vm180_vm3, %v148_v14  ;;  %v169_v25 = vld [vmem:[%s1202_s5 + $0xc8] sm:$0xff]  ;;  %v170_v27 = vld [vmem:[%s1202_s5 + $0xd0] sm:$0xff]  ;;  %v171_v29 = vld [vmem:[%s1202_s5 + $0xd8] sm:$0xff] }
  0x20   : > { %979 = vmatprep.mubr.msk.f32.mxu1 %vm180_vm3, %v164_v15  ;;  %v156_v30 = vld [vmem:[%s1202_s5 + $0x60] sm:$0xff]  ;;  %v157_v32 = vld [vmem:[%s1202_s5 + $0x68] sm:$0xff]  ;;  %v158_v34 = vld [vmem:[%s1202_s5 + $0x70] sm:$0xff] }
  0x21   : > { %v172_v31 = vld [vmem:[%s1202_s5 + $0xe0] sm:$0xff]  ;;  %v173_v33 = vld [vmem:[%s1202_s5 + $0xe8] sm:$0xff]  ;;  %v174_v35 = vld [vmem:[%s1202_s5 + $0xf0] sm:$0xff] }
  0x22   : > { %956 = vmatmul.mubr.msk.f32.gmra.mrb[4].mxu0 %vm180_vm3, %v149_v16  ;;  %v159_v36 = vld [vmem:[%s1202_s5 + $0x78] sm:$0xff] }
  0x23   : > { %980 = vmatmul.mubr.msk.f32.gmra.mrb[4].mxu1 %vm180_vm3, %v165_v17  ;;  %958 = vmatprep.mubr.msk.f32.mxu0 %vm180_vm3, %v150_v18  ;;  %v175_v37 = vld [vmem:[%s1202_s5 + $0xf8] sm:$0xff] }
  0x24   : > { %982 = vmatprep.mubr.msk.f32.mxu1 %vm180_vm3, %v166_v19 }
  0x26   : > { %959 = vmatmul.mubr.msk.f32.gmra.mrb[6].mxu0 %vm180_vm3, %v151_v20 }
  0x27   : > { %983 = vmatmul.mubr.msk.f32.gmra.mrb[6].mxu1 %vm180_vm3, %v167_v21  ;;  %961 = vmatprep.mubr.msk.f32.mxu0 %vm180_vm3, %v152_v22 }
  0x28   : > { %985 = vmatprep.mubr.msk.f32.mxu1 %vm180_vm3, %v168_v23 }
  0x2a   : > { %962 = vmatmul.mubr.msk.f32.gmra.mrb[8].mxu0 %vm180_vm3, %v153_v24 }
  0x2b   : > { %986 = vmatmul.mubr.msk.f32.gmra.mrb[8].mxu1 %vm180_vm3, %v169_v25  ;;  %964 = vmatprep.mubr.msk.f32.mxu0 %vm180_vm3, %v154_v26 }
  0x2c   : > { %988 = vmatprep.mubr.msk.f32.mxu1 %vm180_vm3, %v170_v27 }
  0x2e   : > { %965 = vmatmul.mubr.msk.f32.gmra.mrb[10].mxu0 %vm180_vm3, %v155_v28 }
  0x2f   : > { %989 = vmatmul.mubr.msk.f32.gmra.mrb[10].mxu1 %vm180_vm3, %v171_v29  ;;  %967 = vmatprep.mubr.msk.f32.mxu0 %vm180_vm3, %v156_v30 }
  0x30   : > { %991 = vmatprep.mubr.msk.f32.mxu1 %vm180_vm3, %v172_v31 }
  0x32   : > { %968 = vmatmul.mubr.msk.f32.gmra.mrb[12].mxu0 %vm180_vm3, %v157_v32 }
  0x33   : > { %992 = vmatmul.mubr.msk.f32.gmra.mrb[12].mxu1 %vm180_vm3, %v173_v33  ;;  %970 = vmatprep.mubr.msk.f32.mxu0 %vm180_vm3, %v158_v34 }
  0x34   : > { %994 = vmatprep.mubr.msk.f32.mxu1 %vm180_vm3, %v174_v35 }
  0x36   : > { %971 = vmatmul.mubr.msk.f32.gmra.mrb[14].mxu0 %vm180_vm3, %v159_v36 }
  0x37   : > { %995 = vmatmul.mubr.msk.f32.gmra.mrb[14].mxu1 %vm180_vm3, %v175_v37 }
  0xed   : > { %v951_v39 = vpop.f32.mrb[0].mxu0 }
  0xee   : > { %v975_v40 = vpop.f32.mrb[0].mxu1  ;;  %v507_v41 = vmax.f32 %v951_v39, 0.0  ;;  %v347_v43 = vpop.f32.mrb[1].mxu0 }
  0xef   : > { %v523_v42 = vmax.f32 %v975_v40, 0.0  ;;  %v427_v44 = vpop.f32.mrb[1].mxu1  ;;  %v506_v45 = vmax.f32 %v347_v43, 0.0 }
  0xf0   : > { %v522_v46 = vmax.f32 %v427_v44, 0.0  ;;  %557 = vst.msk [vmem:[#allocation2 + $0x10] sm:$0xff] %vm555_vm4, %v507_v41 }
  0xf1   : > { %573 = vst.msk [vmem:[#allocation2 + $0xd0] sm:$0xff] %vm555_vm4, %v523_v42  ;;  %556 = vst.msk [vmem:[#allocation2 + $0x8] sm:$0xff] %vm555_vm4, %v506_v45  ;;  %v954_v47 = vpop.f32.mrb[2].mxu0 }
  0xf2   : > { %572 = vst.msk [vmem:[#allocation2 + $0xc8] sm:$0xff] %vm555_vm4, %v522_v46  ;;  %v978_v48 = vpop.f32.mrb[2].mxu1  ;;  %v509_v49 = vmax.f32 %v954_v47, 0.0  ;;  %v357_v51 = vpop.f32.mrb[3].mxu0 }
  0xf3   : > { %v525_v50 = vmax.f32 %v978_v48, 0.0  ;;  %v437_v52 = vpop.f32.mrb[3].mxu1  ;;  %v508_v53 = vmax.f32 %v357_v51, 0.0 }
  0xf4   : > { %v524_v54 = vmax.f32 %v437_v52, 0.0  ;;  %559 = vst.msk [vmem:[#allocation2 + $0x28] sm:$0xff] %vm555_vm4, %v509_v49 }
  0xf5   : > { %575 = vst.msk [vmem:[#allocation2 + $0xe8] sm:$0xff] %vm555_vm4, %v525_v50  ;;  %558 = vst.msk [vmem:[#allocation2 + $0x20] sm:$0xff] %vm555_vm4, %v508_v53  ;;  %v957_v55 = vpop.f32.mrb[4].mxu0 }
  0xf6   : > { %574 = vst.msk [vmem:[#allocation2 + $0xe0] sm:$0xff] %vm555_vm4, %v524_v54  ;;  %v981_v56 = vpop.f32.mrb[4].mxu1  ;;  %v511_v57 = vmax.f32 %v957_v55, 0.0  ;;  %v367_v59 = vpop.f32.mrb[5].mxu0  ;;  %v734_v55 = vld [vmem:[#allocation3] sm:$0xff] }
  0xf7   : > { %v527_v58 = vmax.f32 %v981_v56, 0.0  ;;  %v447_v60 = vpop.f32.mrb[5].mxu1  ;;  %v510_v61 = vmax.f32 %v367_v59, 0.0 }
  0xf8   : > { %v526_v62 = vmax.f32 %v447_v60, 0.0  ;;  %v589_v63 = vld [vmem:[#allocation2 + $0x7] ss:$2 sm:$0xff]  ;;  %v621_v0 = vld [vmem:[#allocation2 + $0x8] ss:$2 sm:$0xff]  ;;  %561 = vst.msk [vmem:[#allocation2 + $0x40] sm:$0xff] %vm555_vm4, %v511_v57 }
  0xf9   : > { %577 = vst.msk [vmem:[#allocation2 + $0x100] sm:$0xff] %vm555_vm4, %v527_v58  ;;  %v652_v1 = vmax.f32 %v589_v63, %v621_v0  ;;  %v605_v2 = vld [vmem:[#allocation2 + $0xc7] ss:$2 sm:$0xff]  ;;  %v637_v3 = vld [vmem:[#allocation2 + $0xc8] ss:$2 sm:$0xff]  ;;  %560 = vst.msk [vmem:[#allocation2 + $0x38] sm:$0xff] %vm555_vm4, %v510_v61 }
  0xfa   : > { %v685_v4 = vld [vmem:[#allocation2 + $0xc9] ss:$2 sm:$0xff]  ;;  %576 = vst.msk [vmem:[#allocation2 + $0xf8] sm:$0xff] %vm555_vm4, %v526_v62  ;;  %v660_v6 = vmax.f32 %v605_v2, %v637_v3  ;;  %v960_v7 = vpop.f32.mrb[6].mxu0  ;;  %v984_v8 = vpop.f32.mrb[6].mxu1 }
  0xfb   : > { %v669_v5 = vld [vmem:[#allocation2 + $0x9] ss:$2 sm:$0xff]  ;;  %v513_v10 = vmax.f32 %v960_v7, 0.0  ;;  %v529_v11 = vmax.f32 %v984_v8, 0.0  ;;  %v377_v12 = vpop.f32.mrb[7].mxu0  ;;  %v457_v13 = vpop.f32.mrb[7].mxu1 }
  0xfc   : > { %v700_v9 = vmax.f32 %v652_v1, %v669_v5  ;;  %v708_v14 = vmax.f32 %v660_v6, %v685_v4  ;;  %v591_v15 = vld [vmem:[#allocation2 + $0x1f] ss:$2 sm:$0xff]  ;;  %v623_v16 = vld [vmem:[#allocation2 + $0x20] ss:$2 sm:$0xff]  ;;  %v512_v23 = vmax.f32 %v377_v12, 0.0  ;;  %v528_v24 = vmax.f32 %v457_v13, 0.0 }
  0xfd   : > { %v653_v17 = vmax.f32 %v591_v15, %v623_v16  ;;  %v607_v18 = vld [vmem:[#allocation2 + $0xdf] ss:$2 sm:$0xff]  ;;  %v639_v19 = vld [vmem:[#allocation2 + $0xe0] ss:$2 sm:$0xff]  ;;  %563 = vst.msk [vmem:[#allocation2 + $0x58] sm:$0xff] %vm555_vm4, %v513_v10  ;;  %579 = vst.msk [vmem:[#allocation2 + $0x118] sm:$0xff] %vm555_vm4, %v529_v11 }
  0xfe   : > { %718 = vst.msk [vmem:[#allocation3 + $0x8] sm:$0xff] %vm555_vm4, %v700_v9  ;;  %v687_v20 = vld [vmem:[#allocation2 + $0xe1] ss:$2 sm:$0xff]  ;;  %726 = vst.msk [vmem:[#allocation3 + $0x48] sm:$0xff] %vm555_vm4, %v708_v14  ;;  %v661_v22 = vmax.f32 %v607_v18, %v639_v19  ;;  %v963_v25 = vpop.f32.mrb[8].mxu0  ;;  %v987_v26 = vpop.f32.mrb[8].mxu1 }
  0xff   : > { %v671_v21 = vld [vmem:[#allocation2 + $0x21] ss:$2 sm:$0xff]  ;;  %v515_v28 = vmax.f32 %v963_v25, 0.0  ;;  %v531_v29 = vmax.f32 %v987_v26, 0.0  ;;  %v387_v30 = vpop.f32.mrb[9].mxu0  ;;  %v467_v31 = vpop.f32.mrb[9].mxu1 }
 0x100   : > { %v701_v27 = vmax.f32 %v653_v17, %v671_v21  ;;  %v709_v32 = vmax.f32 %v661_v22, %v687_v20  ;;  %v593_v33 = vld [vmem:[#allocation2 + $0x37] ss:$2 sm:$0xff]  ;;  %v625_v34 = vld [vmem:[#allocation2 + $0x38] ss:$2 sm:$0xff]  ;;  %562 = vst.msk [vmem:[#allocation2 + $0x50] sm:$0xff] %vm555_vm4, %v512_v23  ;;  %578 = vst.msk [vmem:[#allocation2 + $0x110] sm:$0xff] %vm555_vm4, %v528_v24 }
 0x101   : > { %v654_v35 = vmax.f32 %v593_v33, %v625_v34  ;;  %v609_v36 = vld [vmem:[#allocation2 + $0xf7] ss:$2 sm:$0xff]  ;;  %v641_v37 = vld [vmem:[#allocation2 + $0xf8] ss:$2 sm:$0xff]  ;;  %565 = vst.msk [vmem:[#allocation2 + $0x70] sm:$0xff] %vm555_vm4, %v515_v28  ;;  %581 = vst.msk [vmem:[#allocation2 + $0x130] sm:$0xff] %vm555_vm4, %v531_v29 }
 0x102   : > { %719 = vst.msk [vmem:[#allocation3 + $0x10] sm:$0xff] %vm555_vm4, %v701_v27  ;;  %v689_v38 = vld [vmem:[#allocation2 + $0xf9] ss:$2 sm:$0xff]  ;;  %727 = vst.msk [vmem:[#allocation3 + $0x50] sm:$0xff] %vm555_vm4, %v709_v32  ;;  %v662_v40 = vmax.f32 %v609_v36, %v641_v37  ;;  %v514_v41 = vmax.f32 %v387_v30, 0.0  ;;  %v530_v42 = vmax.f32 %v467_v31, 0.0 }
 0x103   : > { %v673_v39 = vld [vmem:[#allocation2 + $0x39] ss:$2 sm:$0xff]  ;;  %v966_v43 = vpop.f32.mrb[10].mxu0  ;;  %v990_v44 = vpop.f32.mrb[10].mxu1 }
 0x104   : > { %v702_v45 = vmax.f32 %v654_v35, %v673_v39  ;;  %v517_v46 = vmax.f32 %v966_v43, 0.0  ;;  %v533_v47 = vmax.f32 %v990_v44, 0.0  ;;  %v397_v48 = vpop.f32.mrb[11].mxu0  ;;  %v477_v49 = vpop.f32.mrb[11].mxu1  ;;  %v710_v50 = vmax.f32 %v662_v40, %v689_v38  ;;  %564 = vst.msk [vmem:[#allocation2 + $0x68] sm:$0xff] %vm555_vm4, %v514_v41  ;;  %580 = vst.msk [vmem:[#allocation2 + $0x128] sm:$0xff] %vm555_vm4, %v530_v42 }
 0x105   : > { %v516_v51 = vmax.f32 %v397_v48, 0.0  ;;  %v532_v52 = vmax.f32 %v477_v49, 0.0  ;;  %v969_v53 = vpop.f32.mrb[12].mxu0  ;;  %v742_v56 = vld [vmem:[#allocation3 + $0x8] sm:$0xff] }
 0x106   : > { %720 = vst.msk [vmem:[#allocation3 + $0x18] sm:$0xff] %vm555_vm4, %v702_v45  ;;  %567 = vst.msk [vmem:[#allocation2 + $0x88] sm:$0xff] %vm555_vm4, %v517_v46  ;;  %v993_v54 = vpop.f32.mrb[12].mxu1  ;;  %v519_v57 = vmax.f32 %v969_v53, 0.0  ;;  %v407_v59 = vpop.f32.mrb[13].mxu0  ;;  %v750_v4 = vmax.f32 %v734_v55, %v742_v56 }
 0x107   : > { %583 = vst.msk [vmem:[#allocation2 + $0x148] sm:$0xff] %vm555_vm4, %v533_v47  ;;  %728 = vst.msk [vmem:[#allocation3 + $0x58] sm:$0xff] %vm555_vm4, %v710_v50  ;;  %v535_v58 = vmax.f32 %v993_v54, 0.0  ;;  %v487_v60 = vpop.f32.mrb[13].mxu1  ;;  %v595_v61 = vld [vmem:[#allocation2 + $0x4f] ss:$2 sm:$0xff] }
 0x108   : > { %566 = vst.msk [vmem:[#allocation2 + $0x80] sm:$0xff] %vm555_vm4, %v516_v51  ;;  %582 = vst.msk [vmem:[#allocation2 + $0x140] sm:$0xff] %vm555_vm4, %v532_v52  ;;  %v627_v62 = vld [vmem:[#allocation2 + $0x50] ss:$2 sm:$0xff]  ;;  %v675_v63 = vld [vmem:[#allocation2 + $0x51] ss:$2 sm:$0xff] }
 0x109   : > { %v655_v0 = vmax.f32 %v595_v61, %v627_v62  ;;  %v611_v1 = vld [vmem:[#allocation2 + $0x10f] ss:$2 sm:$0xff]  ;;  %v643_v2 = vld [vmem:[#allocation2 + $0x110] ss:$2 sm:$0xff]  ;;  %569 = vst.msk [vmem:[#allocation2 + $0xa0] sm:$0xff] %vm555_vm4, %v519_v57  ;;  %585 = vst.msk [vmem:[#allocation2 + $0x160] sm:$0xff] %vm555_vm4, %v535_v58 }
 0x10a   : > { %v691_v3 = vld [vmem:[#allocation2 + $0x111] ss:$2 sm:$0xff]  ;;  %v663_v5 = vmax.f32 %v611_v1, %v643_v2  ;;  %v518_v6 = vmax.f32 %v407_v59, 0.0  ;;  %v534_v7 = vmax.f32 %v487_v60, 0.0  ;;  %v972_v8 = vpop.f32.mrb[14].mxu0  ;;  %v996_v9 = vpop.f32.mrb[14].mxu1 }
 0x10b   : > { %v735_v10 = vld [vmem:[#allocation3 + $0x10] sm:$0xff]  ;;  %v703_v11 = vmax.f32 %v655_v0, %v675_v63  ;;  %v521_v12 = vmax.f32 %v972_v8, 0.0  ;;  %v537_v13 = vmax.f32 %v996_v9, 0.0  ;;  %v417_v14 = vpop.f32.mrb[15].mxu0  ;;  %v497_v15 = vpop.f32.mrb[15].mxu1 }
 0x10c   : > { %v767_v16 = vmax.f32 %v750_v4, %v735_v10  ;;  %v711_v17 = vmax.f32 %v663_v5, %v691_v3  ;;  %v597_v18 = vld [vmem:[#allocation2 + $0x67] ss:$2 sm:$0xff]  ;;  %v629_v19 = vld [vmem:[#allocation2 + $0x68] ss:$2 sm:$0xff]  ;;  %568 = vst.msk [vmem:[#allocation2 + $0x98] sm:$0xff] %vm555_vm4, %v518_v6  ;;  %584 = vst.msk [vmem:[#allocation2 + $0x158] sm:$0xff] %vm555_vm4, %v534_v7 }
 0x10d   : > { %721 = vst.msk [vmem:[#allocation3 + $0x20] sm:$0xff] %vm555_vm4, %v703_v11  ;;  %v656_v20 = vmax.f32 %v597_v18, %v629_v19  ;;  %v613_v21 = vld [vmem:[#allocation2 + $0x127] ss:$2 sm:$0xff]  ;;  %v645_v22 = vld [vmem:[#allocation2 + $0x128] ss:$2 sm:$0xff]  ;;  %571 = vst.msk [vmem:[#allocation2 + $0xb8] sm:$0xff] %vm555_vm4, %v521_v12 }
 0x10e   : > { %v693_v23 = vld [vmem:[#allocation2 + $0x129] ss:$2 sm:$0xff]  ;;  %587 = vst.msk [vmem:[#allocation2 + $0x178] sm:$0xff] %vm555_vm4, %v537_v13  ;;  %775 = vst.msk [vmem:[%s1328_s8] sm:$0xff] %vm555_vm4, %v767_v16  ;;  %v664_v25 = vmax.f32 %v613_v21, %v645_v22  ;;  %v520_v36 = vmax.f32 %v417_v14, 0.0  ;;  %v536_v37 = vmax.f32 %v497_v15, 0.0 }
 0x10f   : > { %729 = vst.msk [vmem:[#allocation3 + $0x60] sm:$0xff] %vm555_vm4, %v711_v17  ;;  %v677_v24 = vld [vmem:[#allocation2 + $0x69] ss:$2 sm:$0xff]  ;;  %v631_v27 = vld [vmem:[#allocation2 + $0x80] ss:$2 sm:$0xff]  ;;  %v743_v39 = vld [vmem:[#allocation3 + $0x18] sm:$0xff] }
 0x110   : > { %v599_v26 = vld [vmem:[#allocation2 + $0x7f] ss:$2 sm:$0xff]  ;;  %v704_v28 = vmax.f32 %v656_v20, %v677_v24  ;;  %v647_v31 = vld [vmem:[#allocation2 + $0x140] ss:$2 sm:$0xff]  ;;  %v712_v33 = vmax.f32 %v664_v25, %v693_v23  ;;  %570 = vst.msk [vmem:[#allocation2 + $0xb0] sm:$0xff] %vm555_vm4, %v520_v36  ;;  %586 = vst.msk [vmem:[#allocation2 + $0x170] sm:$0xff] %vm555_vm4, %v536_v37  ;;  %v751_v49 = vmax.f32 %v735_v10, %v743_v39 }
 0x111   : > { %v657_v29 = vmax.f32 %v599_v26, %v631_v27  ;;  %v615_v30 = vld [vmem:[#allocation2 + $0x13f] ss:$2 sm:$0xff]  ;;  %v739_v44 = vld [vmem:[#allocation3 + $0x50] sm:$0xff] }
 0x112   : > { %v695_v32 = vld [vmem:[#allocation2 + $0x141] ss:$2 sm:$0xff]  ;;  %v665_v35 = vmax.f32 %v615_v30, %v647_v31  ;;  %722 = vst.msk [vmem:[#allocation3 + $0x28] sm:$0xff] %vm555_vm4, %v704_v28  ;;  %v747_v40 = vld [vmem:[#allocation3 + $0x58] sm:$0xff]  ;;  %730 = vst.msk [vmem:[#allocation3 + $0x68] sm:$0xff] %vm555_vm4, %v712_v33 }
 0x113   : > { %v679_v34 = vld [vmem:[#allocation2 + $0x81] ss:$2 sm:$0xff]  ;;  %v633_v43 = vld [vmem:[#allocation2 + $0x98] ss:$2 sm:$0xff]  ;;  %v755_v50 = vmax.f32 %v739_v44, %v747_v40 }
 0x114   : > { %v705_v38 = vmax.f32 %v657_v29, %v679_v34  ;;  %v713_v41 = vmax.f32 %v665_v35, %v695_v32  ;;  %v601_v42 = vld [vmem:[#allocation2 + $0x97] ss:$2 sm:$0xff]  ;;  %v649_v47 = vld [vmem:[#allocation2 + $0x158] ss:$2 sm:$0xff]  ;;  %v746_v17 = vld [vmem:[#allocation3 + $0x48] sm:$0xff] }
 0x115   : > { %v658_v45 = vmax.f32 %v601_v42, %v633_v43  ;;  %v617_v46 = vld [vmem:[#allocation2 + $0x157] ss:$2 sm:$0xff] }
 0x116   : > { %723 = vst.msk [vmem:[#allocation3 + $0x30] sm:$0xff] %vm555_vm4, %v705_v38  ;;  %731 = vst.msk [vmem:[#allocation3 + $0x70] sm:$0xff] %vm555_vm4, %v713_v41  ;;  %v697_v48 = vld [vmem:[#allocation2 + $0x159] ss:$2 sm:$0xff]  ;;  %v666_v52 = vmax.f32 %v617_v46, %v649_v47 }
 0x117   : > { %v681_v51 = vld [vmem:[#allocation2 + $0x99] ss:$2 sm:$0xff]  ;;  %v635_v61 = vld [vmem:[#allocation2 + $0xb0] ss:$2 sm:$0xff] }
 0x118   : > { %v736_v53 = vld [vmem:[#allocation3 + $0x20] sm:$0xff]  ;;  %v706_v55 = vmax.f32 %v658_v45, %v681_v51  ;;  %v714_v58 = vmax.f32 %v666_v52, %v697_v48  ;;  %v603_v60 = vld [vmem:[#allocation2 + $0xaf] ss:$2 sm:$0xff]  ;;  %v651_v1 = vld [vmem:[#allocation2 + $0x170] ss:$2 sm:$0xff] }
 0x119   : > { %v740_v54 = vld [vmem:[#allocation3 + $0x60] sm:$0xff]  ;;  %v768_v56 = vmax.f32 %v751_v49, %v736_v53  ;;  %v744_v59 = vld [vmem:[#allocation3 + $0x28] sm:$0xff]  ;;  %v683_v62 = vld [vmem:[#allocation2 + $0xb1] ss:$2 sm:$0xff]  ;;  %v659_v63 = vmax.f32 %v603_v60, %v635_v61 }
 0x11a   : > { %v772_v57 = vmax.f32 %v755_v50, %v740_v54  ;;  %724 = vst.msk [vmem:[#allocation3 + $0x38] sm:$0xff] %vm555_vm4, %v706_v55  ;;  %732 = vst.msk [vmem:[#allocation3 + $0x78] sm:$0xff] %vm555_vm4, %v714_v58  ;;  %v619_v0 = vld [vmem:[#allocation2 + $0x16f] ss:$2 sm:$0xff]  ;;  %v752_v3 = vmax.f32 %v736_v53, %v744_v59 }
 0x11b   : > { %776 = vst.msk [vmem:[%s1328_s8 + $0x8] sm:$0xff] %vm555_vm4, %v768_v56  ;;  %v699_v2 = vld [vmem:[#allocation2 + $0x171] ss:$2 sm:$0xff]  ;;  %v667_v4 = vmax.f32 %v619_v0, %v651_v1  ;;  %v748_v7 = vld [vmem:[#allocation3 + $0x68] sm:$0xff]  ;;  %v707_v8 = vmax.f32 %v659_v63, %v683_v62 }
 0x11c   : > { %780 = vst.msk [vmem:[%s1328_s8 + $0x28] sm:$0xff] %vm555_vm4, %v772_v57  ;;  %v756_v9 = vmax.f32 %v740_v54, %v748_v7 }
 0x11d   : > { %v737_v5 = vld [vmem:[#allocation3 + $0x30] sm:$0xff]  ;;  %v715_v11 = vmax.f32 %v667_v4, %v699_v2  ;;  %725 = vst.msk [vmem:[#allocation3 + $0x40] sm:$0xff] %vm555_vm4, %v707_v8 }
 0x11e   : > { %v741_v6 = vld [vmem:[#allocation3 + $0x70] sm:$0xff]  ;;  %v769_v10 = vmax.f32 %v752_v3, %v737_v5 }
 0x11f   : > { %v773_v12 = vmax.f32 %v756_v9, %v741_v6  ;;  %733 = vst.msk [vmem:[#allocation3 + $0x80] sm:$0xff] %vm555_vm4, %v715_v11 }
 0x120   : > { %777 = vst.msk [vmem:[%s1328_s8 + $0x10] sm:$0xff] %vm555_vm4, %v769_v10 }
 0x121   : > { %781 = vst.msk [vmem:[%s1328_s8 + $0x30] sm:$0xff] %vm555_vm4, %v773_v12  ;;  %v745_v13 = vld [vmem:[#allocation3 + $0x38] sm:$0xff] }
 0x122   : > { %v749_v14 = vld [vmem:[#allocation3 + $0x78] sm:$0xff]  ;;  %v753_v15 = vmax.f32 %v737_v5, %v745_v13 }
 0x123   : > { %v757_v18 = vmax.f32 %v741_v6, %v749_v14 }
 0x124   : > { %v738_v16 = vld [vmem:[#allocation3 + $0x40] sm:$0xff] }
 0x125   : > { %v754_v19 = vmax.f32 %v738_v16, %v746_v17  ;;  %v770_v21 = vmax.f32 %v753_v15, %v738_v16 }
 0x126   : > { %v766_v20 = vld [vmem:[#allocation3 + $0x80] sm:$0xff] }
 0x127   : > { %v774_v22 = vmax.f32 %v757_v18, %v766_v20  ;;  %v771_v23 = vmax.f32 %v754_v19, %v739_v44  ;;  %778 = vst.msk [vmem:[%s1328_s8 + $0x18] sm:$0xff] %vm555_vm4, %v770_v21 }
 0x129   : > { %782 = vst.msk [vmem:[%s1328_s8 + $0x38] sm:$0xff] %vm555_vm4, %v774_v22  ;;  %779 = vst.msk [vmem:[%s1328_s8 + $0x20] sm:$0xff] %vm555_vm4, %v771_v23 }
 0x12a   : > { %1067 = shalt.err (!%p1064_p3)
}
 0x12b   : > { %s1068_s27 = scalar_lea.hbm %s1356_s22, 1024  ;;  %s1072_s30 = scalar_lea.hbm %s1411_s2, 2048 }
 0x12c   : > { %p1069_p4 = scmp.ne.s32.totalorder %s1356_s22, %s1068_s27  ;;  %p1073_p9 = scmp.lt.u32.totalorder %s1356_s22, %s1411_s2 }
 0x12d   : > { %p1074_p10 = scmp.lt.u32.totalorder %s1072_s30, %s1068_s27  ;;  %p1076_p12 = scmp.lt.u32.totalorder %s1068_s27, %s1356_s22 }
 0x12e   : > { %p1070_p7 = pnand %p1069_p4, %p1176_p5 }
 0x12f   : > { %p1075_p11 = por %p1074_p10, %p1073_p9 }
 0x130   : > { %p1071_p8 = pneg %p1070_p7 }
 0x131   : > { %p1077_p13 = por %p1076_p12, %p1075_p11 }
 0x133   : > { %p1078_p0 = pnand %p1077_p13, %p1071_p8 }
 0x135   : > { %1081 = shalt.err (!%p1078_p0)
}
 0x136   : > { %s1121_s5 = smov 128   ;;  %s1122_s6 = smov 8  }
 0x137   : > { %1011 = dma.vmem_to_hbm [thread:$0]  (%p1176_p5), %s1358_s16, 1024, %s1356_s22, %s1368_s13, %s1121_s5, %s1121_s5, %s1122_s6  }
 0x138 PF: > { %p1017_p1 = scmp.ge.s32.totalorder %s1116_s12, 2  ;;  %s812_s7 = sand.u32 1, %s1104_s9  }
 0x139   : > { %s813_s8 = scalar_lea.sflag [#allocation5], %s812_s7 }
 0x13a   : > { %p1014_p2 = pnand %p1017_p1, %p1180_p6 }
 0x13c   : > { %1099 = dma.done.wait (!%p1014_p2), %s813_s8, 1024  }
 0x13d   : > { %1101 = vsyncadd (!%p1014_p2), %s813_s8, 4294966272  ;;  %p12_p3 = scmp.ge.s32.totalorder %s1163_s15, 4   ;;  %s1414_s9 = smov %s1108_s10 }
 0x13e   : > { %s1415_s10 = smov %s1112_s11  ;;  %s1416_s11 = smov %s1174_s18 }
 0x13f   : > { %s1417_s12 = smov %s1163_s15  ;;  %14 = sbr.rel (!%p12_p3) target bundleno = 3 (0x3), region = 113 }
 0x146   :  { %818 = vsyncpa [#allocation5], 1 }
 0x147   :  { %820 = vsyncpa [#allocation5 + $0x1], 1 }

</bundles_post_ra>
